<compile_context>
chip_gen: v6e
topology: v6e:2x2x1
jax: 0.10.0
libtpu: 0.0.40
codegen_flags: <defaults>
</compile_context>

<pallas_src>
import functools

import jax
import jax.numpy as jnp
from jax.experimental import pallas as pl
from jax.experimental.pallas import tpu as pltpu


_MIB = 1024 * 1024


# ----------------------------------------------------------------------------
# Generation-aware tiling plan.
# ----------------------------------------------------------------------------
def _vmem_capacity_bytes():
    """Physical VMEM per TensorCore; falls back to the smallest (v7x) figure."""
    try:
        return int(pltpu.get_tpu_info().vmem_capacity_bytes)
    except Exception:
        return 64 * _MIB


def _round_down_tile_h(h, logits_target, bytes_per_row):
    th = max(8, (logits_target // max(1, bytes_per_row)) // 8 * 8)
    th = min(h, th)
    th = max(8, th // 8 * 8)
    while th > 8 and h % th != 0:
        th -= 8
    if h % th != 0:
        th = h                      # full-H block is always a legal tiling
    return th


def _tiling_plan(c, h, w, itemsize):
    """Pick tile height + a flag for small-VMEM (v7x-class) chips."""
    vmem_cap = _vmem_capacity_bytes()
    small_vmem = vmem_cap < 100 * _MIB          # v7x: 64 MiB/TC; v5e/v6e: 128 MiB
    # HBM-bound on v5e/v6e: big tiles amortize per-step overhead and reach the
    # ~85%+ of-roofline regime.  On v7x keep tiles a bit smaller so the
    # double-buffered working set stays well inside 64 MiB.
    logits_target = (7 * _MIB) if small_vmem else (12 * _MIB)
    th = _round_down_tile_h(h, logits_target, c * w * itemsize)
    return th, small_vmem


def _vmem_limit(c, tile_h, w, itemsize, small_vmem):
    """Explicit VMEM budget: double-buffered inputs + scratch + headroom."""
    logits_block = c * tile_h * w * itemsize
    labels_block = tile_h * w * 4
    scratch = 2 * tile_h * w * 4
    needed = 2 * logits_block + 2 * labels_block + scratch + 8 * _MIB
    cap = (38 * _MIB) if small_vmem else (96 * _MIB)
    if needed > cap:                            # pathological shapes only
        return int(needed)
    return int(min(max(needed, 24 * _MIB), cap))


def _pick_n_groups(b, n_tiles, small_vmem):
    """Outer 'parallel' split of the H tiles.

    v5e/v6e are single-TensorCore: extra groups only add scratch re-inits and
    extra tiny writebacks, so use 1.  On v7x (2 TCs) only raise n_groups when
    B alone does not split evenly across both cores."""
    if not small_vmem or b % 2 == 0:
        return 1
    for g in (2, 4, 8):
        if n_tiles % g == 0:
            return g
    return 1


# ----------------------------------------------------------------------------
# Pallas kernel: weighted cross-entropy with ignore_index, NCHW-direct.
# Accumulates  num = sum_i w[y_i] * (-log softmax(x_i)[y_i])   (valid pixels)
#              den = sum_i w[y_i]                              (valid pixels)
# per (batch, h-group); final loss = sum(num)/sum(den) (PyTorch weighted-mean).
# ----------------------------------------------------------------------------
def _weighted_ce_kernel(logits_ref, labels_ref, out_ref, num_acc, den_acc,
                        *, ignore_index, class_weights):
    # logits_ref : (C, TH, W)     native-NCHW tile (class leading, W on lanes)
    # labels_ref : (TH, W)        int32 label tile (lane-dense)
    # out_ref    : (1, 1, 1, 2)   packed per-(batch, group) [num, den]
    # num_acc/den_acc : (TH, W) f32 VMEM scratch, elementwise accumulators
    i = pl.program_id(2)

    @pl.when(i == 0)
    def _():
        num_acc[...] = jnp.zeros_like(num_acc)
        den_acc[...] = jnp.zeros_like(den_acc)

    x = logits_ref[...].astype(jnp.float32)        # (C, TH, W)
    y = labels_ref[...]                            # (TH, W) int32

    # Numerically stable log-sum-exp over the small leading class axis.
    # The shifted logits (x - m) feed exp directly, so sub->exp->add fuse
    # per-vreg and no (C, TH, W) temp is materialized in VMEM.
    m = jnp.max(x, axis=0)                         # (TH, W)
    s = jnp.sum(jnp.exp(x - m[None]), axis=0)      # (TH, W)
    lse = m + jnp.log(s)                           # (TH, W)

    # Select target-class logit and per-pixel class weight with a short static
    # loop over C: one compare + two selects per class (pure VPU); weights are
    # compile-time constants like the module's hard-coded FloatTensor.
    target_x = jnp.zeros_like(lse)
    wpix = jnp.zeros_like(lse)
    for c_idx, w_c in enumerate(class_weights):
        sel = y == c_idx
        target_x = jnp.where(sel, x[c_idx], target_x)
        wpix = jnp.where(sel, jnp.float32(w_c), wpix)

    # ignore_index / out-of-range labels never match the loop above, so wpix
    # is already 0 there; only mask explicitly when ignore_index aliases a
    # real class id.  (Out-of-range non-ignore labels silently drop out rather
    # than raising like PyTorch — documented behaviour difference.)
    if 0 <= ignore_index < len(class_weights):
        wpix = jnp.where(y == ignore_index, jnp.float32(0.0), wpix)

    nll = lse - target_x                           # -log softmax(x)[y]

    # Guard 0*inf -> NaN for ignored pixels; accumulate elementwise and defer
    # the cross-lane/sublane collapse to the last inner step.
    num_acc[...] += jnp.where(wpix > 0.0, wpix * nll, jnp.float32(0.0))
    den_acc[...] += wpix

    @pl.when(i == pl.num_programs(2) - 1)
    def _():
        ns = jnp.sum(num_acc[...]).reshape(1, 1, 1, 1)
        ds = jnp.sum(den_acc[...]).reshape(1, 1, 1, 1)
        lane = jax.lax.broadcasted_iota(jnp.int32, (1, 1, 1, 2), 3)
        out_ref[...] = jnp.where(lane == 0, ns, ds)   # packed [num, den]


def weighted_cross_entropy(prediction_nchw, labels_bhw, class_weights,
                           ignore_index, *, tile_h=None, n_groups=None):
    """nn.CrossEntropyLoss(weight=class_weights, ignore_index=ignore_index)
    on an NCHW prediction / (B,H,W) labels, computed with a Pallas kernel that
    reads the prediction in its native NCHW layout (no transpose)."""
    b, c, h, w = prediction_nchw.shape
    itemsize = jnp.dtype(prediction_nchw.dtype).itemsize

    auto_th, small_vmem = _tiling_plan(c, h, w, itemsize)
    if tile_h is None:
        tile_h = auto_th
    assert h % tile_h == 0, (h, tile_h)
    n_tiles = h // tile_h

    if n_groups is None:
        n_groups = _pick_n_groups(b, n_tiles, small_vmem)
    assert n_tiles % n_groups == 0, (n_tiles, n_groups)
    inner = n_tiles // n_groups

    labels = labels_bhw.astype(jnp.int32)

    if class_weights is None:
        cw = (1.0,) * c
    else:
        # NOTE: concretized at trace time (matches the module's hard-coded
        # constant weights); would break for traced weight arrays.
        cw = tuple(float(v) for v in jnp.ravel(jnp.asarray(class_weights)))
    assert len(cw) == c

    kernel = functools.partial(_weighted_ce_kernel,
                               ignore_index=int(ignore_index),
                               class_weights=cw)

    vmem_limit = _vmem_limit(c, tile_h, w, itemsize, small_vmem)

    packed = pl.pallas_call(
        kernel,
        out_shape=jax.ShapeDtypeStruct((b, n_groups, 1, 2), jnp.float32),
        grid_spec=pltpu.PrefetchScalarGridSpec(
            num_scalar_prefetch=0,
            grid=(b, n_groups, inner),
            in_specs=[
                # prediction read directly in NCHW: (C, TH, W) lane-dense tile
                pl.BlockSpec((pl.Squeezed(), c, tile_h, w),
                             lambda bi, g, i: (bi, 0, g * inner + i, 0)),
                # labels: lane-dense (TH, W) tile
                pl.BlockSpec((pl.Squeezed(), tile_h, w),
                             lambda bi, g, i: (bi, g * inner + i, 0)),
            ],
            out_specs=pl.BlockSpec((1, 1, 1, 2),
                                   lambda bi, g, i: (bi, g, 0, 0)),
            scratch_shapes=[pltpu.VMEM((tile_h, w), jnp.float32),
                            pltpu.VMEM((tile_h, w), jnp.float32)],
        ),
        compiler_params=pltpu.CompilerParams(
            # batch & h-group axes are independent (megacore-shardable on
            # v7x); the inner h-tile axis carries the accumulation.
            dimension_semantics=("parallel", "parallel", "arbitrary"),
            vmem_limit_bytes=vmem_limit),
    )(prediction_nchw, labels)

    # Tiny (B, n_groups, 1, 2) partials -> final weighted mean in plain JAX.
    # NOTE: if every pixel is ignored this is 0/0 == NaN, matching PyTorch's
    # weighted-mean CrossEntropyLoss behaviour.
    num = jnp.sum(packed[..., 0])
    den = jnp.sum(packed[..., 1])
    return num / den


# ----------------------------------------------------------------------------
# JAX port of LossWrapper (the wrapper itself is control-flow glue).
# ----------------------------------------------------------------------------
class LossWrapper:
    def __init__(self, config):
        self.config = config
        self.loss_weightings = config['losses']
        self.dataset = config['dataset']
        self.experiment = config['experiment']
        class_info = config['datasets_info'][self.dataset]['CLASS_INFO'][self.experiment][1]
        # ignore_class = len(class_info) - 1 if 255 is a (remapped) class id
        self.ignore_class = len(class_info) - 1 if 255 in class_info else -1
        # Deterministic in-script "class weights" (stands in for the CITYSCAPES
        # hard-coded FloatTensor); shape = (num_prediction_channels,).
        c = config['num_classes']
        self.class_weights = 0.8 + 0.05 * jnp.arange(c, dtype=jnp.float32)
        # Optional tiling overrides (used by the small-shape demo below).
        self.ce_tile_h = config.get('ce_tile_h')
        self.ce_n_groups = config.get('ce_n_groups')
        self.loss_vals = {k: jnp.float32(0.0) for k in self.loss_weightings}

    def forward(self, prediction, labels, loss_list=None, deep_features=None,
                interm_prediction=None, epoch=None, skip_mem_update=False):
        total_loss = jnp.float32(0.0)
        loss_list = list(self.loss_weightings.keys()) if loss_list is None else loss_list
        for loss_class, weight in self.loss_weightings.items():
            if loss_class in loss_list and loss_class == 'CrossEntropyLoss':
                # prediction may be bf16 (kernel upcasts in-register; halves
                # HBM traffic on the memory-bound v5e/v6e path).
                loss = weighted_cross_entropy(
                    prediction, labels, self.class_weights, self.ignore_class,
                    tile_h=self.ce_tile_h, n_groups=self.ce_n_groups)
            else:
                # TODO(synk): LovaszSoftmax / DenseContrastive* / TwoScaleLoss /
                # OhemCrossEntropy are external classes not defined in this
                # module; they contribute 0 here.
                loss = jnp.float32(0.0)
            loss = loss * jnp.float32(weight)
            self.loss_vals[loss_class] = loss
            total_loss = total_loss + loss
        return total_loss

    __call__ = forward


# ----------------------------------------------------------------------------
# Pure-JAX reference for the CE path (correctness check).
# ----------------------------------------------------------------------------
def _ce_reference(prediction_nchw, labels_bhw, class_weights, ignore_index):
    b, c, h, w = prediction_nchw.shape
    logits = jnp.transpose(prediction_nchw, (0, 2, 3, 1)).reshape(-1, c).astype(jnp.float32)
    labels = labels_bhw.reshape(-1).astype(jnp.int32)
    logp = jax.nn.log_softmax(logits, axis=-1)
    valid = labels != ignore_index
    safe = jnp.where(valid, labels, 0)
    nll = -jnp.take_along_axis(logp, safe[:, None], axis=-1)[:, 0]
    wts = class_weights[safe] * valid.astype(jnp.float32)
    return jnp.sum(wts * nll) / jnp.sum(wts)


if __name__ == "__main__":
    key = jax.random.PRNGKey(0)
    # Small synthetic shapes; W = 128 keeps tiles lane-dense, H/tile_h = 4
    # tiles split into 2 groups x 2 inner steps to exercise the full grid
    # (auto-tiling would collapse these small shapes to a single tile).
    B, C, H, W = 2, 8, 32, 128

    config = {
        'losses': {'CrossEntropyLoss': 1.0, 'LovaszSoftmax': 0.5},
        'device': 'tpu',
        'dataset': 'SYNTH',
        'experiment': 1,
        'num_classes': C,
        # class ids 0..C-1 plus 255 (ignore) -> ignore_class = C
        'datasets_info': {'SYNTH': {'CLASS_INFO': {1: (None, list(range(C)) + [255])}}},
        # small-shape tiling overrides so the demo exercises a multi-step grid
        'ce_tile_h': 8,
        'ce_n_groups': 2,
    }

    k1, k2 = jax.random.split(key)
    prediction = jax.random.normal(k1, (B, C, H, W), dtype=jnp.float32)
    # labels in [0, C]; value C == ignore_class gets ignored
    labels = jax.random.randint(k2, (B, H, W), 0, C + 1, dtype=jnp.int32)

    wrapper = LossWrapper(config)
    total_loss = wrapper(prediction, labels)
    total_loss = jax.block_until_ready(total_loss)

    ref = _ce_reference(prediction, labels, wrapper.class_weights,
                        wrapper.ignore_class) * config['losses']['CrossEntropyLoss']
    assert jnp.allclose(total_loss, ref, rtol=1e-5, atol=1e-5), (total_loss, ref)

    print("KERNEL_OK")
</pallas_src>

<mosaic_0001>
module attributes {stable_mosaic.version = 11 : i64} {
  func.func @_weighted_ce_kernel(%arg0: i32, %arg1: i32, %arg2: i32, %arg3: memref<1x8x8x128xf32, #tpu.memory_space<vmem>>, %arg4: memref<1x8x128xi32, #tpu.memory_space<vmem>>, %arg5: memref<1x1x1x2xf32, #tpu.memory_space<vmem>>, %arg6: memref<8x128xf32, #tpu.memory_space<vmem>>, %arg7: memref<8x128xf32, #tpu.memory_space<vmem>>) attributes {dimension_semantics = [#tpu.dimension_semantics<parallel>, #tpu.dimension_semantics<parallel>, #tpu.dimension_semantics<arbitrary>], iteration_bounds = array<i64: 2, 2, 2>, scalar_prefetch = 0 : i64, scratch_operands = 2 : i64, tpu.core_type = #tpu.core_type<tc>, window_params = [{transform_indices = @transform_0, window_bounds = array<i64: 1, 8, 8, 128>}, {transform_indices = @transform_1, window_bounds = array<i64: 1, 8, 128>}, {transform_indices = @transform_2, window_bounds = array<i64: 1, 1, 1, 2>}]} {
    %c0_i32 = arith.constant 0 : i32
    %0 = arith.cmpi eq, %arg2, %c0_i32 : i32
    %1 = arith.extui %0 : i1 to i32
    %c0_i32_0 = arith.constant 0 : i32
    %2 = arith.cmpi ne, %1, %c0_i32_0 : i32
    scf.if %2 {
      %cst_31 = arith.constant 0.000000e+00 : f32
      %88 = vector.broadcast %cst_31 : f32 to vector<8x128xf32>
      %c0_32 = arith.constant 0 : index
      %c0_33 = arith.constant 0 : index
      %89 = vector.load %arg6[%c0_32, %c0_33] : memref<8x128xf32, #tpu.memory_space<vmem>>, vector<8x128xf32>
      tpu.vector_store %arg6[%c0_32, %c0_33], %88 {strides = array<i32>} : memref<8x128xf32, #tpu.memory_space<vmem>>, vector<8x128xf32>,
      %cst_34 = arith.constant 0.000000e+00 : f32
      %90 = vector.broadcast %cst_34 : f32 to vector<8x128xf32>
      %c0_35 = arith.constant 0 : index
      %c0_36 = arith.constant 0 : index
      %91 = vector.load %arg7[%c0_35, %c0_36] : memref<8x128xf32, #tpu.memory_space<vmem>>, vector<8x128xf32>
      tpu.vector_store %arg7[%c0_35, %c0_36], %90 {strides = array<i32>} : memref<8x128xf32, #tpu.memory_space<vmem>>, vector<8x128xf32>,
    } else {
    }
    %c0 = arith.constant 0 : index
    %c0_1 = arith.constant 0 : index
    %c0_2 = arith.constant 0 : index
    %c0_3 = arith.constant 0 : index
    %3 = vector.load %arg3[%c0, %c0_1, %c0_2, %c0_3] : memref<1x8x8x128xf32, #tpu.memory_space<vmem>>, vector<1x8x8x128xf32>
    %4 = vector.shape_cast %3 : vector<1x8x8x128xf32> to vector<8x8x128xf32>
    %c0_4 = arith.constant 0 : index
    %c0_5 = arith.constant 0 : index
    %c0_6 = arith.constant 0 : index
    %5 = vector.load %arg4[%c0_4, %c0_5, %c0_6] : memref<1x8x128xi32, #tpu.memory_space<vmem>>, vector<1x8x128xi32>
    %6 = vector.shape_cast %5 : vector<1x8x128xi32> to vector<8x128xi32>
    %cst = arith.constant dense<0xFF800000> : vector<8x128xf32>
    %7 = vector.multi_reduction <maximumf>, %4, %cst [0] : vector<8x8x128xf32> to vector<8x128xf32>
    %8 = vector.shape_cast %7 : vector<8x128xf32> to vector<1x8x128xf32>
    %9 = vector.broadcast %8 : vector<1x8x128xf32> to vector<8x8x128xf32>
    %10 = arith.subf %4, %9 : vector<8x8x128xf32>
    %11 = math.exp %10 : vector<8x8x128xf32>
    %cst_7 = arith.constant dense<0.000000e+00> : vector<8x128xf32>
    %12 = vector.multi_reduction <add>, %11, %cst_7 [0] : vector<8x8x128xf32> to vector<8x128xf32>
    %13 = math.log %12 : vector<8x128xf32>
    %14 = arith.addf %7, %13 : vector<8x128xf32>
    %cst_8 = arith.constant 0.000000e+00 : f32
    %15 = vector.broadcast %cst_8 : f32 to vector<8x128xf32>
    %cst_9 = arith.constant 0.000000e+00 : f32
    %16 = vector.broadcast %cst_9 : f32 to vector<8x128xf32>
    %c0_i32_10 = arith.constant 0 : i32
    %17 = vector.broadcast %c0_i32_10 : i32 to vector<8x128xi32>
    %18 = arith.cmpi eq, %6, %17 : vector<8x128xi32>
    %19 = vector.extract_strided_slice %4 {offsets = [0, 0, 0], sizes = [1, 8, 128], strides = [1, 1, 1]} : vector<8x8x128xf32> to vector<1x8x128xf32>
    %20 = vector.shape_cast %19 : vector<1x8x128xf32> to vector<8x128xf32>
    %21 = arith.select %18, %20, %15 : vector<8x128xi1>, vector<8x128xf32>
    %cst_11 = arith.constant 8.000000e-01 : f32
    %22 = vector.broadcast %cst_11 : f32 to vector<8x128xf32>
    %23 = arith.select %18, %22, %16 : vector<8x128xi1>, vector<8x128xf32>
    %c1_i32 = arith.constant 1 : i32
    %24 = vector.broadcast %c1_i32 : i32 to vector<8x128xi32>
    %25 = arith.cmpi eq, %6, %24 : vector<8x128xi32>
    %26 = vector.extract_strided_slice %4 {offsets = [1, 0, 0], sizes = [1, 8, 128], strides = [1, 1, 1]} : vector<8x8x128xf32> to vector<1x8x128xf32>
    %27 = vector.shape_cast %26 : vector<1x8x128xf32> to vector<8x128xf32>
    %28 = arith.select %25, %27, %21 : vector<8x128xi1>, vector<8x128xf32>
    %cst_12 = arith.constant 8.500000e-01 : f32
    %29 = vector.broadcast %cst_12 : f32 to vector<8x128xf32>
    %30 = arith.select %25, %29, %23 : vector<8x128xi1>, vector<8x128xf32>
    %c2_i32 = arith.constant 2 : i32
    %31 = vector.broadcast %c2_i32 : i32 to vector<8x128xi32>
    %32 = arith.cmpi eq, %6, %31 : vector<8x128xi32>
    %33 = vector.extract_strided_slice %4 {offsets = [2, 0, 0], sizes = [1, 8, 128], strides = [1, 1, 1]} : vector<8x8x128xf32> to vector<1x8x128xf32>
    %34 = vector.shape_cast %33 : vector<1x8x128xf32> to vector<8x128xf32>
    %35 = arith.select %32, %34, %28 : vector<8x128xi1>, vector<8x128xf32>
    %cst_13 = arith.constant 0.900000035 : f32
    %36 = vector.broadcast %cst_13 : f32 to vector<8x128xf32>
    %37 = arith.select %32, %36, %30 : vector<8x128xi1>, vector<8x128xf32>
    %c3_i32 = arith.constant 3 : i32
    %38 = vector.broadcast %c3_i32 : i32 to vector<8x128xi32>
    %39 = arith.cmpi eq, %6, %38 : vector<8x128xi32>
    %40 = vector.extract_strided_slice %4 {offsets = [3, 0, 0], sizes = [1, 8, 128], strides = [1, 1, 1]} : vector<8x8x128xf32> to vector<1x8x128xf32>
    %41 = vector.shape_cast %40 : vector<1x8x128xf32> to vector<8x128xf32>
    %42 = arith.select %39, %41, %35 : vector<8x128xi1>, vector<8x128xf32>
    %cst_14 = arith.constant 0.950000047 : f32
    %43 = vector.broadcast %cst_14 : f32 to vector<8x128xf32>
    %44 = arith.select %39, %43, %37 : vector<8x128xi1>, vector<8x128xf32>
    %c4_i32 = arith.constant 4 : i32
    %45 = vector.broadcast %c4_i32 : i32 to vector<8x128xi32>
    %46 = arith.cmpi eq, %6, %45 : vector<8x128xi32>
    %47 = vector.extract_strided_slice %4 {offsets = [4, 0, 0], sizes = [1, 8, 128], strides = [1, 1, 1]} : vector<8x8x128xf32> to vector<1x8x128xf32>
    %48 = vector.shape_cast %47 : vector<1x8x128xf32> to vector<8x128xf32>
    %49 = arith.select %46, %48, %42 : vector<8x128xi1>, vector<8x128xf32>
    %cst_15 = arith.constant 1.000000e+00 : f32
    %50 = vector.broadcast %cst_15 : f32 to vector<8x128xf32>
    %51 = arith.select %46, %50, %44 : vector<8x128xi1>, vector<8x128xf32>
    %c5_i32 = arith.constant 5 : i32
    %52 = vector.broadcast %c5_i32 : i32 to vector<8x128xi32>
    %53 = arith.cmpi eq, %6, %52 : vector<8x128xi32>
    %54 = vector.extract_strided_slice %4 {offsets = [5, 0, 0], sizes = [1, 8, 128], strides = [1, 1, 1]} : vector<8x8x128xf32> to vector<1x8x128xf32>
    %55 = vector.shape_cast %54 : vector<1x8x128xf32> to vector<8x128xf32>
    %56 = arith.select %53, %55, %49 : vector<8x128xi1>, vector<8x128xf32>
    %cst_16 = arith.constant 1.050000e+00 : f32
    %57 = vector.broadcast %cst_16 : f32 to vector<8x128xf32>
    %58 = arith.select %53, %57, %51 : vector<8x128xi1>, vector<8x128xf32>
    %c6_i32 = arith.constant 6 : i32
    %59 = vector.broadcast %c6_i32 : i32 to vector<8x128xi32>
    %60 = arith.cmpi eq, %6, %59 : vector<8x128xi32>
    %61 = vector.extract_strided_slice %4 {offsets = [6, 0, 0], sizes = [1, 8, 128], strides = [1, 1, 1]} : vector<8x8x128xf32> to vector<1x8x128xf32>
    %62 = vector.shape_cast %61 : vector<1x8x128xf32> to vector<8x128xf32>
    %63 = arith.select %60, %62, %56 : vector<8x128xi1>, vector<8x128xf32>
    %cst_17 = arith.constant 1.100000e+00 : f32
    %64 = vector.broadcast %cst_17 : f32 to vector<8x128xf32>
    %65 = arith.select %60, %64, %58 : vector<8x128xi1>, vector<8x128xf32>
    %c7_i32 = arith.constant 7 : i32
    %66 = vector.broadcast %c7_i32 : i32 to vector<8x128xi32>
    %67 = arith.cmpi eq, %6, %66 : vector<8x128xi32>
    %68 = vector.extract_strided_slice %4 {offsets = [7, 0, 0], sizes = [1, 8, 128], strides = [1, 1, 1]} : vector<8x8x128xf32> to vector<1x8x128xf32>
    %69 = vector.shape_cast %68 : vector<1x8x128xf32> to vector<8x128xf32>
    %70 = arith.select %67, %69, %63 : vector<8x128xi1>, vector<8x128xf32>
    %cst_18 = arith.constant 1.150000e+00 : f32
    %71 = vector.broadcast %cst_18 : f32 to vector<8x128xf32>
    %72 = arith.select %67, %71, %65 : vector<8x128xi1>, vector<8x128xf32>
    %73 = arith.subf %14, %70 : vector<8x128xf32>
    %c0_19 = arith.constant 0 : index
    %c0_20 = arith.constant 0 : index
    %74 = vector.load %arg6[%c0_19, %c0_20] : memref<8x128xf32, #tpu.memory_space<vmem>>, vector<8x128xf32>
    %cst_21 = arith.constant 0.000000e+00 : f32
    %75 = vector.broadcast %cst_21 : f32 to vector<8x128xf32>
    %76 = arith.cmpf ogt, %72, %75 : vector<8x128xf32>
    %77 = arith.mulf %72, %73 : vector<8x128xf32>
    %cst_22 = arith.constant 0.000000e+00 : f32
    %78 = vector.broadcast %cst_22 : f32 to vector<8x128xf32>
    %79 = arith.select %76, %77, %78 : vector<8x128xi1>, vector<8x128xf32>
    %80 = arith.addf %74, %79 : vector<8x128xf32>
    %c0_23 = arith.constant 0 : index
    %c0_24 = arith.constant 0 : index
    %81 = vector.load %arg6[%c0_23, %c0_24] : memref<8x128xf32, #tpu.memory_space<vmem>>, vector<8x128xf32>
    tpu.vector_store %arg6[%c0_23, %c0_24], %80 {strides = array<i32>} : memref<8x128xf32, #tpu.memory_space<vmem>>, vector<8x128xf32>,
    %c0_25 = arith.constant 0 : index
    %c0_26 = arith.constant 0 : index
    %82 = vector.load %arg7[%c0_25, %c0_26] : memref<8x128xf32, #tpu.memory_space<vmem>>, vector<8x128xf32>
    %83 = arith.addf %82, %72 : vector<8x128xf32>
    %c0_27 = arith.constant 0 : index
    %c0_28 = arith.constant 0 : index
    %84 = vector.load %arg7[%c0_27, %c0_28] : memref<8x128xf32, #tpu.memory_space<vmem>>, vector<8x128xf32>
    tpu.vector_store %arg7[%c0_27, %c0_28], %83 {strides = array<i32>} : memref<8x128xf32, #tpu.memory_space<vmem>>, vector<8x128xf32>,
    %c1_i32_29 = arith.constant 1 : i32
    %85 = arith.cmpi eq, %arg2, %c1_i32_29 : i32
    %86 = arith.extui %85 : i1 to i32
    %c0_i32_30 = arith.constant 0 : i32
    %87 = arith.cmpi ne, %86, %c0_i32_30 : i32
    scf.if %87 {
      %c0_31 = arith.constant 0 : index
      %c0_32 = arith.constant 0 : index
      %88 = vector.load %arg6[%c0_31, %c0_32] : memref<8x128xf32, #tpu.memory_space<vmem>>, vector<8x128xf32>
      %89 = vector.shape_cast %88 : vector<8x128xf32> to vector<1x8x128xf32>
      %cst_33 = arith.constant dense<0.000000e+00> : vector<1xf32>
      %90 = vector.multi_reduction <add>, %89, %cst_33 [1, 2] : vector<1x8x128xf32> to vector<1xf32>
      %91 = vector.shape_cast %90 : vector<1xf32> to vector<1x1x1xf32>
      %92 = vector.extract %91[0, 0, 0] : f32 from vector<1x1x1xf32>
      %93 = vector.broadcast %92 : f32 to vector<1x1x1x1xf32>
      %c0_34 = arith.constant 0 : index
      %c0_35 = arith.constant 0 : index
      %94 = vector.load %arg7[%c0_34, %c0_35] : memref<8x128xf32, #tpu.memory_space<vmem>>, vector<8x128xf32>
      %95 = vector.shape_cast %94 : vector<8x128xf32> to vector<1x8x128xf32>
      %cst_36 = arith.constant dense<0.000000e+00> : vector<1xf32>
      %96 = vector.multi_reduction <add>, %95, %cst_36 [1, 2] : vector<1x8x128xf32> to vector<1xf32>
      %97 = vector.shape_cast %96 : vector<1xf32> to vector<1x1x1xf32>
      %98 = vector.extract %97[0, 0, 0] : f32 from vector<1x1x1xf32>
      %99 = vector.broadcast %98 : f32 to vector<1x1x1x1xf32>
      %100 = tpu.iota {dimensions = array<i32: 3>} : vector<1x1x1x2xi32>
      %c0_i32_37 = arith.constant 0 : i32
      %101 = vector.broadcast %c0_i32_37 : i32 to vector<1x1x1x2xi32>
      %102 = arith.cmpi eq, %100, %101 : vector<1x1x1x2xi32>
      %103 = vector.shape_cast %93 : vector<1x1x1x1xf32> to vector<1x1x1x1xf32>
      %104 = vector.broadcast %103 : vector<1x1x1x1xf32> to vector<1x1x1x2xf32>
      %105 = vector.shape_cast %99 : vector<1x1x1x1xf32> to vector<1x1x1x1xf32>
      %106 = vector.broadcast %105 : vector<1x1x1x1xf32> to vector<1x1x1x2xf32>
      %107 = arith.select %102, %104, %106 : vector<1x1x1x2xi1>, vector<1x1x1x2xf32>
      %c0_38 = arith.constant 0 : index
      %c0_39 = arith.constant 0 : index
      %c0_40 = arith.constant 0 : index
      %c0_41 = arith.constant 0 : index
      %108 = vector.load %arg5[%c0_38, %c0_39, %c0_40, %c0_41] : memref<1x1x1x2xf32, #tpu.memory_space<vmem>>, vector<1x1x1x2xf32>
      tpu.vector_store %arg5[%c0_38, %c0_39, %c0_40, %c0_41], %107 {strides = array<i32>} : memref<1x1x1x2xf32, #tpu.memory_space<vmem>>, vector<1x1x1x2xf32>,
    } else {
    }
    return
  }
  func.func @transform_0(%arg0: i32, %arg1: i32, %arg2: i32) -> (i32, i32, i32, i32) {
    %c2_i32 = arith.constant 2 : i32
    %0 = arith.muli %arg1, %c2_i32 : i32
    %1 = arith.addi %0, %arg2 : i32
    %c0_i32 = arith.constant 0 : i32
    %c0_i32_0 = arith.constant 0 : i32
    %c0_i32_1 = arith.constant 0 : i32
    return %arg0, %c0_i32, %1, %c0_i32_0 : i32, i32, i32, i32
  }
  func.func @transform_1(%arg0: i32, %arg1: i32, %arg2: i32) -> (i32, i32, i32) {
    %c2_i32 = arith.constant 2 : i32
    %0 = arith.muli %arg1, %c2_i32 : i32
    %1 = arith.addi %0, %arg2 : i32
    %c0_i32 = arith.constant 0 : i32
    %c0_i32_0 = arith.constant 0 : i32
    return %arg0, %1, %c0_i32 : i32, i32, i32
  }
  func.func @transform_2(%arg0: i32, %arg1: i32, %arg2: i32) -> (i32, i32, i32, i32) {
    %c0_i32 = arith.constant 0 : i32
    %c0_i32_0 = arith.constant 0 : i32
    %c0_i32_1 = arith.constant 0 : i32
    return %arg0, %arg1, %c0_i32, %c0_i32_0 : i32, i32, i32, i32
  }
}

</mosaic_0001>

<bundles_post_ra>
// kernel: tpu_custom_call.1
= control target key start
LH: loop header
LB: loop body
LE: loop exit
PB: predicated region body
PF: predicated region fallthrough
CT: control target
= control target key end

     0   :  { %s1242_s0 = inlined_call_operand.hbm [shape: f32[2,8,32,128], index: 0, kind: input, shape index: {}]   ;;  %s1243_s1 = inlined_call_operand.hbm [shape: s32[2,32,128], index: 1, kind: input, shape index: {}]   ;;  %s1244_s2 = inlined_call_operand.hbm [shape: f32[2,2,1,2], index: 2, kind: output, shape index: {}]  }
   0x1   :  { %1255 = sst [smem:[#allocation24_spill]] %s1242_s0 }
   0x2   :  { %1256 = sst [smem:[#allocation25_spill]] %s1244_s2 }
   0x3   :  { %7 = vsyncpa [#allocation5], 0 }
   0x4   :  { %9 = vsyncpa [#allocation5 + $0x1], 0 }
   0x5   :  { %10 = vsyncpa [#allocation8], 0 }
   0x6   :  { %12 = vsyncpa [#allocation8 + $0x1], 0 }
   0x7   :  { %13 = vsyncpa [#allocation6], 0 }
   0x8   :  { %15 = vsyncpa [#allocation6 + $0x1], 0  ;;  %s891_s9 = smov 0   ;;  %s893_s10 = smov 0  }
   0x9   :  { %s895_s11 = smov 0   ;;  %s897_s12 = smov 0  }
   0xa   :  { %s899_s13 = smov 0   ;;  %s901_s14 = smov 0  }
   0xb   :  { %s903_s15 = smov 0   ;;  %s905_s16 = smov 0  }
   0xc   :  { %s907_s17 = smov 0   ;;  %s909_s18 = smov 0  }
   0xd   :  { %s911_s19 = smov 0   ;;  %s913_s20 = smov 0  }
   0xe   :  { %s915_s21 = smov 0  }
   0xf LB: > { %1257 = sst [smem:[#allocation13_spill]] %s818_s9  ;;  %s495_s22 = sadd.s32 4294967295, %s866_s21   ;;  %s866_s21 = sphi %s915_s21, %s21_s21   ;;  %s862_s20 = sphi %s913_s20, %s1296_s20   ;;  %s858_s19 = sphi %s911_s19, %s1287_s19   ;;  %s854_s18 = sphi %s909_s18, %s1286_s18   ;;  %s850_s17 = sphi %s907_s17, %s1295_s17   ;;  %s846_s16 = sphi %s905_s16, %s1285_s16   ;;  %s842_s15 = sphi %s903_s15, %s1294_s15   ;;  %s838_s14 = sphi %s901_s14, %s1283_s14   ;;  %s834_s13 = sphi %s899_s13, %s1293_s13   ;;  %s830_s12 = sphi %s897_s12, %s1292_s12   ;;  %s826_s11 = sphi %s895_s11, %s1281_s11   ;;  %s822_s10 = sphi %s893_s10, %s1291_s10   ;;  %s818_s9 = sphi %s891_s9, %s1290_s9  }
  0x10   : > { %1258 = sst [smem:[#allocation14_spill]] %s826_s11  ;;  %s33_s24 = sadd.s32 1, %s854_s18 }
  0x11   : > { %1259 = sst [smem:[#allocation15_spill]] %s838_s14  ;;  %s36_s25 = sadd.s32 1, %s858_s19 }
  0x12   : > { %1260 = sst [smem:[#allocation16_spill]] %s854_s18  ;;  %p34_p0 = scmp.ge.s32.totalorder %s33_s24, 2 }
  0x13   : > { %1261 = sst [smem:[#allocation17_spill]] %s858_s19  ;;  %s40_s26 = sadd.s32 1, %s862_s20 }
  0x14   : > { %s497_s27 = sshll.u32 %s858_s19, 1  ;;  %s53_s28 = sadd.s32 1, %s838_s14 }
  0x15   : > { %s1298_s24 = smov (%p34_p0, %s33_s24), 0  ;;  %s1300_s25 = smov (!%p34_p0, %s36_s25), %s858_s19 }
  0x16   : > { %1262 = sst [smem:[#allocation18_spill]] %s1298_s24  ;;  %s967_s29 = sadd.s32 %s854_s18, %s497_s27 }
  0x17   : > { %p60_p1 = scmp.ne.s32.totalorder %s838_s14, %s834_s13  ;;  %p38_p2 = scmp.ge.s32.totalorder %s1300_s25, 2 }
  0x18   : > { %p61_p3 = scmp.eq.s32.totalorder %s866_s21, 0  ;;  %p66_p4 = scmp.ne.s32.totalorder %s834_s13, %s830_s12 }
  0x19   : > { %p67_p5 = scmp.eq.s32.totalorder %s495_s22, 0  ;;  %s1302_s25 = smov (%p38_p2, %s1300_s25), 0 }
  0x1a   : > { %1263 = sst [smem:[#allocation19_spill]] %s1302_s25  ;;  %s1304_s26 = smov (!%p38_p2, %s40_s26), %s862_s20 }
  0x1b   : > { %s498_s30 = sshll.u32 %s1302_s25, 1  ;;  %p980_p6 = por %p61_p3, %p60_p1 }
  0x1c   : > { %p42_p7 = scmp.ge.s32.totalorder %s1304_s26, 2  ;;  %s47_s4 = sadd.s32 %s498_s30, %s1298_s24 }
  0x1d   : > { %s49_s5 = ssub.s32 %s967_s29, %s47_s4  ;;  %p986_p8 = por %p67_p5, %p66_p4 }
  0x1e   : > { %s1306_s26 = smov (%p42_p7, %s1304_s26), 0  ;;  %s109_s7 = ssub.s32 %s858_s19, %s1302_s25 }
  0x1f   : > { %1266 = sst [smem:[#allocation20_spill]] %s1306_s26  ;;  %s113_s8 = sadd.s32 1, %s826_s11 }
  0x20   : > { %s48_s12 = ssub.s32 %s862_s20, %s1306_s26  ;;  %p123_p9 = scmp.ne.s32.totalorder %s826_s11, %s822_s10 }
  0x21   : > { %s50_s27 = sor.u32 %s49_s5, %s48_s12  ;;  %s110_s23 = sor.u32 %s109_s7, %s48_s12 }
  0x22   : > { %p51_p10 = scmp.eq.s32.totalorder %s50_s27, 0  ;;  %p111_p11 = scmp.eq.s32.totalorder %s110_s23, 0 }
  0x23   : > { %p124_p12 = scmp.eq.s32.totalorder %s495_s22, 7  ;;  %p129_p13 = scmp.ne.s32.totalorder %s822_s10, %s818_s9 }
  0x24   : > { %s1004_s30 = scalar_select %p51_p10, %s838_s14, %s53_s28  }
  0x25   : > { %s1007_s4 = scalar_select %p111_p11, %s826_s11, %s113_s8  }
  0x26   : > { %1267 = sst [smem:[#allocation21_spill]] %s1004_s30  ;;  %p1009_p0 = por %p124_p12, %p123_p9 }
  0x27   : > { %1268 = sst [smem:[#allocation22_spill]] %s1007_s4  ;;  %s1270_s26 = sadd.s32 4294967294, %s866_s21  }
  0x28   : > { %p130_p1 = scmp.eq.s32.totalorder %s1270_s26, 7  ;;  %p541_p2 = scmp.lt.s32.totalorder %s866_s21, 8 }
  0x29   : > { %s1021_s23 = sand.u32 1, %s838_s14   ;;  %s505_s28 = sshll.u32 %s862_s20, 5 }
  0x2a   : > { %p1016_p3 = por %p130_p1, %p129_p13  ;;  %s503_s22 = sshll.u32 %s1021_s23, 6 }
  0x2b   : > { %s161_s7 = sadd.s32 %s505_s28, %s967_s29  ;;  %s154_s8 = scalar_lea.vmem [#allocation4], %s503_s22 }
  0x2c   : > { %s1271_s5 = scalar_select %p1016_p3, 1, 0 }
  0x2d   : > { %s164_s12 = sshll.u32 %s154_s8, 4  ;;  %s506_s27 = sshll.u32 %s161_s7, 7  ;;  %s165_s12 = int_to_ptr.vmem [resolvable:$true] %s164_s12 }
  0x2e   : > { %1272 = sst [smem:[#allocation23_spill]] %s1271_s5  ;;  %p1031_p4 = pnand %p541_p2, %p980_p6 }
  0x2f   : > { %s1273_s0 = sld [smem:[#allocation24_spill]]  ;;  %s151_s30 = scalar_lea.sflag [#allocation5], %s1021_s23 }
  0x30   : > { %p672_p5 = pneg %p1031_p4  ;;  %s683_s14 = scalar_lea.vmem %s165_s12, 1024 }
  0x31   : > { %p684_p7 = scmp.ne.s32.totalorder %s165_s12, %s683_s14  ;;  %s868_s22 = smov [#allocation4]  }
  0x32   : > { %s688_s28 = sshll.u32 %s868_s22, 4  ;;  %s689_s28 = int_to_ptr.vmem [resolvable:$false] %s688_s28 }
  0x33   : > { %p686_p9 = pnand %p684_p7, %p672_p5  ;;  %s690_s19 = scalar_lea.vmem %s689_s28, 2048 }
  0x34   : > { %p691_p11 = scmp.lt.s32.totalorder %s165_s12, %s689_s28  ;;  %p692_p6 = scmp.lt.s32.totalorder %s690_s19, %s683_s14 }
  0x35   : > { %s163_s26 = scalar_lea.hbm %s1273_s0, %s506_s27  ;;  %p687_p10 = pneg %p686_p9 }
  0x36   : > { %p693_p12 = por %p692_p6, %p691_p11 }
  0x38   : > { %p694_p13 = pnand %p693_p12, %p687_p10 }
  0x3a   : > { %697 = shalt.err (!%p694_p13)
}
  0x3b   : > { %s869_s24 = smov 512   ;;  %s870_s3 = smov 128  }
  0x3c   : > { %s871_s7 = smov 8   ;;  %p511_p1 = scmp.ge.s32.totalorder %s866_s21, 1 }
  0x3d   : > { %533 = dma.hbm_to_vmem [thread:$0]  (!%p1031_p4), %s163_s26, 1024, %s165_s12, %s151_s30, %s869_s24, %s870_s3, %s871_s7  }
  0x3e   : > { %p194_p2 = scmp.lt.s32.totalorder %s866_s21, 9  ;;  %s507_s8 = sshll.u32 %s1021_s23, 3 }
  0x3f   : > { %s509_s27 = sshll.u32 %s862_s20, 2  ;;  %s178_s22 = scalar_lea.vmem [#allocation7], %s507_s8 }
  0x40   : > { %p1046_p7 = pnand %p511_p1, %p194_p2  ;;  %s189_s28 = sshll.u32 %s178_s22, 4  ;;  %s190_s28 = int_to_ptr.vmem [resolvable:$true] %s189_s28 }
  0x41   : > { %s185_s19 = sadd.s32 %s509_s27, %s967_s29  ;;  %s175_s9 = scalar_lea.sflag [#allocation8], %s1021_s23 }
  0x42   : > { %s510_s0 = sshll.u32 %s185_s19, 7  ;;  %s711_s2 = scalar_lea.vmem %s190_s28, 128 }
  0x43   : > { %s187_s5 = scalar_lea.hbm %s1243_s1, %s510_s0  ;;  %p712_p9 = scmp.ne.s32.totalorder %s190_s28, %s711_s2 }
  0x44   : > { %s872_s30 = smov [#allocation7]  }
  0x45   : > { %p714_p10 = pnand %p712_p9, %p672_p5  ;;  %s716_s12 = sshll.u32 %s872_s30, 4  ;;  %s717_s12 = int_to_ptr.vmem [resolvable:$false] %s716_s12 }
  0x46   : > { %s718_s26 = scalar_lea.vmem %s717_s12, 256  ;;  %p719_p6 = scmp.lt.s32.totalorder %s190_s28, %s717_s12 }
  0x47   : > { %p715_p11 = pneg %p714_p10  ;;  %p720_p12 = scmp.lt.s32.totalorder %s718_s26, %s711_s2 }
  0x49   : > { %p721_p13 = por %p720_p12, %p719_p6 }
  0x4b   : > { %p722_p1 = pnand %p721_p13, %p715_p11 }
  0x4d   : > { %725 = shalt.err (!%p722_p1)
}
  0x4e   : > { %536 = dma.hbm_to_vmem [thread:$0]  (!%p1031_p4), %s187_s5, 128, %s190_s28, %s175_s9  }
  0x4f   : > { %198 = sbr.rel (%p1046_p7) target bundleno = 403 (0x193), region = 28  ;;  %s200_s0 = sand.u32 (!%p1046_p7), 1, %s834_s13  }
  0x50   : > { %s512_s11 = sshll.u32 (!%p1046_p7), %s200_s0, 6  ;;  %s201_s29 = scalar_lea.sflag (!%p1046_p7), [#allocation5], %s200_s0 }
  0x51   : > { %s204_s4 = scalar_lea.vmem (!%p1046_p7), [#allocation4], %s512_s11 }
  0x54   : > { %805 = dma.done.wait (%p986_p8), %s201_s29, 1024  }
  0x55   : > { %807 = vsyncadd (%p986_p8), %s201_s29, 4294966272  ;;  %s513_s2 = sshll.u32 %s200_s0, 3  ;;  %s210_s23 = scalar_lea.sflag [#allocation8], %s200_s0 }
  0x56   : > { %s213_s24 = scalar_lea.vmem [#allocation7], %s513_s2 }
  0x57   : > { %809 = dma.done.wait (%p986_p8), %s210_s23, 128  }
  0x58   : > { %811 = vsyncadd (%p986_p8), %s210_s23, 4294967168  ;;  %s236_s9 = sand.u32 1, %s822_s10   ;;  %p514_p4 = scmp.ne.s32.totalorder %s842_s15, 0 }
  0x59   : > { %s1075_s18 = scalar_lea.vmem [#allocation9], %s236_s9 }
  0x5a   : > { %245 = sbr.rel (%p514_p4) target bundleno = 97 (0x61), region = 40 }
  0x5f   : > { %v873_v0 = vmov 0.0  }
  0x60   : > { %246 = vst [vmem:[#allocation2] sm:$0xff] %v873_v0  ;;  %247 = vst [vmem:[#allocation3] sm:$0xff] %v873_v0 }
  0x61 PF: > { %v1078_v1 = vld [vmem:[%s204_s4] sm:$0xff]  ;;  %v1080_v2 = vld [vmem:[%s204_s4 + $0x8] sm:$0xff]  ;;  %v1082_v3 = vld [vmem:[%s204_s4 + $0x10] sm:$0xff]  ;;  %v874_v15 = vmov 0.0   ;;  %p515_p8 = scmp.ne.s32.totalorder %s842_s15, 1 }
  0x62   : > { %v1084_v4 = vld [vmem:[%s204_s4 + $0x18] sm:$0xff]  ;;  %v1086_v5 = vld [vmem:[%s204_s4 + $0x20] sm:$0xff]  ;;  %v1088_v6 = vld [vmem:[%s204_s4 + $0x28] sm:$0xff] }
  0x63   : > { %v1090_v7 = vld [vmem:[%s204_s4 + $0x30] sm:$0xff]  ;;  %v1092_v8 = vld [vmem:[%s204_s4 + $0x38] sm:$0xff]  ;;  %v1094_v9 = vld [vmem:[%s213_s24] sm:$0xff]  ;;  %v257_v10 = vmax.f32 %v1078_v1, %v1086_v5  ;;  %v258_v11 = vmax.f32 %v1080_v2, %v1088_v6 }
  0x64   : > { %v259_v12 = vmax.f32 %v1082_v3, %v1090_v7  ;;  %v260_v13 = vmax.f32 %v1084_v4, %v1092_v8  ;;  %vm298_vm0 = vcmp.eq.s32.totalorder %v1094_v9, 0  ;;  %vm301_vm1 = vcmp.eq.s32.totalorder %v1094_v9, 1 }
  0x65   : > { %v261_v14 = vmax.f32 %v257_v10, %v258_v11  ;;  %v300_v16 = vsel %vm298_vm0, 0.8, %v874_v15  ;;  %vm304_vm2 = vcmp.eq.s32.totalorder %v1094_v9, 2  ;;  %vm307_vm3 = vcmp.eq.s32.totalorder %v1094_v9, 3 }
  0x66   : > { %v262_v17 = vmax.f32 %v259_v12, %v260_v13  ;;  %v303_v18 = vsel %vm301_vm1, 0.85, %v300_v16  ;;  %vm310_vm4 = vcmp.eq.s32.totalorder %v1094_v9, 4  ;;  %vm313_vm5 = vcmp.eq.s32.totalorder %v1094_v9, 5 }
  0x67   : > { %v306_v19 = vsel %vm304_vm2, 0.90000004, %v303_v18  ;;  %vm316_vm6 = vcmp.eq.s32.totalorder %v1094_v9, 6  ;;  %vm319_vm7 = vcmp.eq.s32.totalorder %v1094_v9, 7  ;;  %v329_v34 = vld [vmem:[#allocation3] sm:$0xff]  ;;  %v299_v56 = vsel %vm298_vm0, %v1078_v1, 0.0 }
  0x68   : > { %v1114_v20 = vmax.f32 %v261_v14, %v262_v17  ;;  %v309_v21 = vsel %vm307_vm3, 0.95000005, %v306_v19  ;;  %v302_v59 = vsel %vm301_vm1, %v1080_v2, %v299_v56  ;;  %v323_v12 = vld [vmem:[#allocation2] sm:$0xff] }
  0x69   : > { %v312_v27 = vsel %vm310_vm4, 1.0, %v309_v21  ;;  %v305_v61 = vsel %vm304_vm2, %v1082_v3, %v302_v59 }
  0x6a   : > { %v264_v22 = vsub.f32 %v1078_v1, %v1114_v20  ;;  %v265_v23 = vsub.f32 %v1080_v2, %v1114_v20  ;;  %v266_v24 = vsub.f32 %v1082_v3, %v1114_v20  ;;  %v267_v25 = vsub.f32 %v1084_v4, %v1114_v20 }
  0x6b   : > { %v268_v26 = vsub.f32 %v1086_v5, %v1114_v20  ;;  %v269_v31 = vsub.f32 %v1088_v6, %v1114_v20  ;;  %v315_v33 = vsel %vm313_vm5, 1.05, %v312_v27  ;;  %v270_v35 = vsub.f32 %v1090_v7, %v1114_v20 }
  0x6c   : > { %v272_v28 = vmul.f32 1.442695, %v264_v22  ;;  %v274_v29 = vmul.f32 1.442695, %v265_v23  ;;  %v276_v30 = vmul.f32 1.442695, %v266_v24  ;;  %v271_v39 = vsub.f32 %v1092_v8, %v1114_v20 }
  0x6d   : > { %v278_v32 = vmul.f32 1.442695, %v267_v25  ;;  %v280_v36 = vmul.f32 1.442695, %v268_v26  ;;  %v318_v37 = vsel %vm316_vm6, 1.1, %v315_v33  ;;  %v308_v62 = vsel %vm307_vm3, %v1084_v4, %v305_v61 }
  0x6e   : > { %652 = vpow2.f32 %v272_v28  ;;  %v321_v38 = vsel %vm319_vm7, 1.15, %v318_v37  ;;  %v282_v40 = vmul.f32 1.442695, %v269_v31  ;;  %v284_v42 = vmul.f32 1.442695, %v270_v35 }
  0x6f   : > { %654 = vpow2.f32 %v274_v29  ;;  %v330_v41 = vadd.f32 %v329_v34, %v321_v38  ;;  %v286_v43 = vmul.f32 1.442695, %v271_v39  ;;  %v311_v63 = vsel %vm310_vm4, %v1086_v5, %v308_v62 }
  0x70   : > { %656 = vpow2.f32 %v276_v30  ;;  %v314_v0 = vsel %vm313_vm5, %v1088_v6, %v311_v63  ;;  %vm324_vm8 = vcmp.gt.f32.partialorder %v321_v38, 0.0 }
  0x71   : > { %658 = vpow2.f32 %v278_v32  ;;  %331 = vst [vmem:[#allocation3] sm:$0xff] %v330_v41  ;;  %v317_v1 = vsel %vm316_vm6, %v1090_v7, %v314_v0 }
  0x72   : > { %660 = vpow2.f32 %v280_v36  ;;  %v320_v3 = vsel %vm319_vm7, %v1092_v8, %v317_v1 }
  0x73   : > { %662 = vpow2.f32 %v282_v40 }
  0x74   : > { %664 = vpow2.f32 %v284_v42 }
  0x75   : > { %666 = vpow2.f32 %v286_v43 }
  0x7b   : > { %v653_v44 = vpop.eup %652 }
  0x7c   : > { %v655_v45 = vpop.eup %654 }
  0x7d   : > { %v657_v46 = vpop.eup %656  ;;  %v288_v47 = vadd.f32 %v655_v45, %v653_v44 }
  0x7e   : > { %v659_v48 = vpop.eup %658 }
  0x7f   : > { %v289_v49 = vadd.f32 %v657_v46, %v288_v47  ;;  %v661_v50 = vpop.eup %660 }
  0x80   : > { %v663_v52 = vpop.eup %662 }
  0x81   : > { %v290_v51 = vadd.f32 %v659_v48, %v289_v49  ;;  %v665_v54 = vpop.eup %664 }
  0x82   : > { %v667_v57 = vpop.eup %666 }
  0x83   : > { %v291_v53 = vadd.f32 %v661_v50, %v290_v51 }
  0x85   : > { %v292_v55 = vadd.f32 %v663_v52, %v291_v53 }
  0x87   : > { %v293_v58 = vadd.f32 %v665_v54, %v292_v55 }
  0x89   : > { %v294_v60 = vadd.f32 %v667_v57, %v293_v58 }
  0x8b   : > { %668 = vlog2.f32 %v294_v60 }
  0x98   : > { %v669_v2 = vpop.eup %668 }
  0x99   : > { %v296_v10 = vmul.f32 0.6931472, %v669_v2 }
  0x9b   : > { %v297_v4 = vadd.f32 %v296_v10, %v1114_v20 }
  0x9d   : > { %v322_v11 = vsub.f32 %v297_v4, %v320_v3 }
  0x9f   : > { %v325_v5 = vmul.f32 %v322_v11, %v321_v38 }
  0xa0   : > { %335 = sbr.rel (%p515_p8) target bundleno = 379 (0x17b), region = 44 }
  0xa1   : > { %v326_v13 = vsel %vm324_vm8, %v325_v5, 0.0 }
  0xa2   : > { %v327_v14 = vadd.f32 %v326_v13, %v323_v12 }
  0xa4   : > { %328 = vst [vmem:[#allocation2] sm:$0xff] %v327_v14 }
  0xa5   : > { %v346_v7 = vld [vmem:[#allocation3] sm:$0xff]  ;;  %v356_v27 = vlaneseq  ;;  %vm362_vm10 = vcmask 8192  }
  0xa7   : > { %v357_v28 = vand.u32 127, %v356_v27 }
  0xa9   : > { %vm358_vm9 = vcmp.eq.s32.totalorder %v357_v28, 0 }
  0xab   : > { %v336_v6 = vld [vmem:[#allocation2] sm:$0xff] }
  0xac   : > { %337 = vadd.xlane.f32.xlu0 %v336_v6 }
  0xb0   : > { %347 = vadd.xlane.f32.xlu0 %v346_v7 }
 0x135   : > { %v338_v15 = vpop.xlane.xlu0 %337 }
 0x136   : > { %v339_v16 = vrot.slane %v338_v15, 4 }
 0x138   : > { %v340_v9 = vadd.f32 %v339_v16, %v338_v15 }
 0x139   : > { %v348_v8 = vpop.xlane.xlu0 %347 }
 0x13a   : > { %v341_v17 = vrot.slane %v340_v9, 2  ;;  %v349_v18 = vrot.slane %v348_v8, 4 }
 0x13c   : > { %v350_v19 = vadd.f32 %v349_v18, %v348_v8  ;;  %v342_v20 = vadd.f32 %v341_v17, %v340_v9 }
 0x13e   : > { %v351_v21 = vrot.slane %v350_v19, 2  ;;  %v343_v22 = vrot.slane %v342_v20, 1 }
 0x140   : > { %v352_v23 = vadd.f32 %v351_v21, %v350_v19  ;;  %v344_v24 = vadd.f32 %v343_v22, %v342_v20 }
 0x142   : > { %520 = vpush %v344_v24  ;;  %v353_v25 = vrot.slane %v352_v23, 1 }
 0x144   : > { %v354_v26 = vadd.f32 %v353_v25, %v352_v23 }
 0x146   : > { %522 = vpush %v354_v26 }
 0x173   : > { %s521_s15 = spop %520 }
 0x174   : > { %v359_v29 = vstv %s521_s15 }
 0x177   : > { %s523_s6 = spop %522 }
 0x178   : > { %v360_v30 = vstv %s523_s6 }
 0x179   : > { %v361_v31 = vsel %vm358_vm9, %v359_v29, %v360_v30 }
 0x17a   : > { %363 = vst.msk [vmem:[%s1075_s18] sm:$0x1] %vm362_vm10, %v361_v31 }
 0x17b PF: > { %s516_s5 = sshll.u32 %s850_s17, 1  ;;  %s379_s7 = sshll.u32 %s1075_s18, 4  ;;  %s380_s7 = int_to_ptr.vmem [resolvable:$true] %s379_s7 }
 0x17c   : > { %s375_s3 = sadd.s32 %s846_s16, %s516_s5  ;;  %s1276_s22 = sld [smem:[#allocation25_spill]] }
 0x17d   : > { %s517_s8 = sshll.u32 %s375_s3, 4  ;;  %s365_s19 = scalar_lea.sflag [#allocation6], %s236_s9 }
 0x17e   : > { %s726_s30 = scalar_lea.vmem %s380_s7, 16  ;;  %s875_s12 = smov [#allocation9]  }
 0x17f   : > { %p727_p5 = scmp.ne.s32.totalorder %s380_s7, %s726_s30  ;;  %s730_s26 = sshll.u32 %s875_s12, 4  ;;  %s731_s26 = int_to_ptr.vmem [resolvable:$false] %s730_s26 }
 0x180   : > { %s732_s0 = scalar_lea.vmem %s731_s26, 32  ;;  %p733_p9 = scmp.lt.s32.totalorder %s380_s7, %s731_s26 }
 0x181   : > { %p728_p2 = pnand %p727_p5, %p1009_p0  ;;  %p734_p10 = scmp.lt.s32.totalorder %s732_s0, %s726_s30 }
 0x182   : > { %s377_s28 = scalar_lea.hbm %s1276_s22, %s517_s8 }
 0x183   : > { %p729_p7 = pneg %p728_p2  ;;  %p735_p11 = por %p734_p10, %p733_p9 }
 0x185   : > { %p736_p6 = pnand %p735_p11, %p729_p7 }
 0x187   : > { %739 = shalt.err (!%p736_p6)
}
 0x188   : > { %s740_s16 = scalar_lea.hbm %s377_s28, 16  ;;  %s744_s29 = scalar_lea.hbm %s1276_s22, 64 }
 0x189   : > { %p741_p12 = scmp.ne.s32.totalorder %s377_s28, %s740_s16  ;;  %p745_p4 = scmp.lt.s32.totalorder %s377_s28, %s1276_s22 }
 0x18a   : > { %p746_p8 = scmp.lt.s32.totalorder %s744_s29, %s740_s16 }
 0x18b   : > { %p742_p13 = pnand %p741_p12, %p1009_p0 }
 0x18c   : > { %p747_p5 = por %p746_p8, %p745_p4 }
 0x18d   : > { %p743_p1 = pneg %p742_p13 }
 0x18f   : > { %p748_p2 = pnand %p747_p5, %p743_p1 }
 0x191   : > { %751 = shalt.err (!%p748_p2)
}
 0x192   : > { %528 = dma.vmem_to_hbm [thread:$0]  (%p1009_p0), %s380_s7, 16, %s377_s28, %s365_s19  }
 0x193 PF: > { %s1277_s23 = sld [smem:[#allocation13_spill]]  ;;  %p542_p7 = scmp.ge.s32.totalorder %s866_s21, 2 }
 0x195   : > { %p538_p9 = pnand %p542_p7, %p1016_p3 }
 0x197   : > { %p539_p10 = pneg %p538_p9 }
 0x199   : > { %s391_s9 = sand.u32 1, %s1277_s23  }
 0x19a   : > { %s392_s18 = scalar_lea.sflag [#allocation6], %s391_s9 }
 0x19b   : > { %813 = dma.done.wait (%p539_p10), %s392_s18, 16  }
 0x19c   : > { %815 = vsyncadd (%p539_p10), %s392_s18, 4294967280  ;;  %s21_s21 = sadd.s32 1, %s866_s21   ;;  %s1280_s25 = sld [smem:[#allocation14_spill]] }
 0x19d   : > { %p1198_p11 = scmp.ge.s32.totalorder %s21_s21, 10   ;;  %s1281_s11 = sld [smem:[#allocation22_spill]] }
 0x19e   : > { %s1282_s6 = sld [smem:[#allocation15_spill]]  ;;  %s1290_s9 = smov %s822_s10 }
 0x19f   : > { %s1283_s14 = sld [smem:[#allocation21_spill]]  ;;  %s1292_s12 = smov %s834_s13 }
 0x1a0   : > { %s1284_s5 = sld [smem:[#allocation16_spill]]  ;;  %s1295_s17 = smov %s862_s20 }
 0x1a1   : > { %s1285_s16 = sld [smem:[#allocation17_spill]] }
 0x1a2   : > { %s1286_s18 = sld [smem:[#allocation18_spill]]  ;;  %s1291_s10 = smov %s1280_s25 }
 0x1a3   : > { %s1287_s19 = sld [smem:[#allocation19_spill]] }
 0x1a4   : > { %s1288_s3 = sld [smem:[#allocation20_spill]]  ;;  %s1293_s13 = smov %s1282_s6 }
 0x1a6   : > { %s1294_s15 = smov %s1284_s5  ;;  %20 = sbr.rel (!%p1198_p11) target bundleno = 15 (0xf), region = 94 }
 0x1aa   : > { %s1296_s20 = smov %s1288_s3 }
 0x1ab   :  { %396 = vsyncpa [#allocation5], 1 }
 0x1ac   :  { %398 = vsyncpa [#allocation5 + $0x1], 1 }
 0x1ad   :  { %399 = vsyncpa [#allocation8], 1 }
 0x1ae   :  { %401 = vsyncpa [#allocation8 + $0x1], 1 }
 0x1af   :  { %402 = vsyncpa [#allocation6], 1 }
 0x1b0   :  { %404 = vsyncpa [#allocation6 + $0x1], 1 }

</bundles_post_ra>
